<compile_context>
chip_gen: v5e
topology: v5e:2x2
jax: 0.10.0
libtpu: 0.0.40
codegen_flags: <defaults>
</compile_context>

<pallas_src>
import math

import jax
import jax.numpy as jnp
from jax.experimental import pallas as pl
from jax.experimental.pallas import tpu as pltpu


_LANES = 128

# Below this element count, skip pallas_call entirely: a 1-step Pallas call is
# dominated by fixed dispatch + pipeline prologue, and XLA's fused elementwise
# is as fast or faster. (Production graphs could raise this to ~64K elements /
# 256 KiB; kept low here so the small demo below still runs the Pallas kernel.)
_XLA_BYPASS_ELEMS = 1024

# Above this many rows, force at least 2 grid steps so the "parallel" axis can
# be sharded across v7x's 2 TensorCores (no-op on v5e/v6e's single TC).
_MIN_SINGLE_TILE_ROWS = 512


def _round_up(v, m):
    return ((v + m - 1) // m) * m


def _pick_max_tile_rows():
    """Largest row-tile per generation, staying inside default scoped VMEM.

    Per-block bytes = tile_rows * 128 * 4 (f32); 3 arrays x 2 pipeline buffers.
      v6e: 8192 rows -> 4 MiB blocks, 24 MiB total  (< 32 MiB default scoped VMEM)
      v5e: 4096 rows -> 2 MiB blocks, 12 MiB total  (< 16 MiB default scoped VMEM)
      v7x: 4096 rows -> 2 MiB blocks, 12 MiB total  (64 MiB physical; keep headroom,
                                                     double buffering is enough)
    """
    try:
        kind = jax.devices()[0].device_kind.lower()
    except Exception:  # pragma: no cover - defensive; default is always safe
        kind = ""
    if "v6" in kind:
        return 8192
    return 4096


_MAX_TILE_ROWS = _pick_max_tile_rows()


# ----------------------------------------------------------------------------
# The "registered Taichi kernel", as a Pallas kernel (elementwise hot path).
# ----------------------------------------------------------------------------
def _tin_elementwise_mul_kernel(x_ref, w_ref, o_ref):
    # out = x * w  -- VPU elementwise on the current (tile_rows, 128) block.
    o_ref[...] = x_ref[...] * w_ref[...]


@jax.jit
def _pallas_elementwise_mul(x, w):
    """Run the registered kernel over arbitrary-shape tensors via a lane-dense 2D view."""
    assert x.shape == w.shape and x.dtype == w.dtype
    orig_shape = x.shape
    dtype = x.dtype
    total = math.prod(orig_shape)

    if total < _XLA_BYPASS_ELEMS:
        # Tiny tensors: let XLA's fused elementwise handle it.
        return x * w

    x_flat = x.reshape(-1)
    w_flat = w.reshape(-1)

    main = (total // _LANES) * _LANES  # 128-lane-aligned prefix
    rows = main // _LANES

    if main == total:
        # Zero-copy: flat reshape to (rows, 128) is a free, lane-dense view.
        x2 = x_flat.reshape(rows, _LANES)
        w2 = w_flat.reshape(rows, _LANES)
    else:
        # Ragged flat size: aligned prefix through Pallas; <128-elem tail below.
        x2 = x_flat[:main].reshape(rows, _LANES)
        w2 = w_flat[:main].reshape(rows, _LANES)

    if rows <= _MIN_SINGLE_TILE_ROWS:
        # Single full-array block, 1 grid step (block == full dims is always legal,
        # even when rows is not a multiple of 8).
        tile_rows = rows
    else:
        # At least 2 grid steps (megacore on v7x); tile_rows is a multiple of 8
        # (sublane alignment) and capped so double-buffered blocks fit scoped VMEM.
        tile_rows = min(_MAX_TILE_ROWS, _round_up(pl.cdiv(rows, 2), 8))

    # No rounding of rows to tile multiples: ragged last block is handled by
    # Pallas (reads padded with unused values, stores masked) — exact for
    # elementwise since padded lanes never reach valid output positions.
    grid = (pl.cdiv(rows, tile_rows),)

    itemsize = jnp.dtype(dtype).itemsize
    cost = pl.CostEstimate(
        flops=rows * _LANES,
        transcendentals=0,
        bytes_accessed=3 * rows * _LANES * itemsize,
    )

    out2 = pl.pallas_call(
        _tin_elementwise_mul_kernel,
        out_shape=jax.ShapeDtypeStruct((rows, _LANES), dtype),
        grid=grid,
        in_specs=[
            pl.BlockSpec((tile_rows, _LANES), lambda i: (i, 0)),
            pl.BlockSpec((tile_rows, _LANES), lambda i: (i, 0)),
        ],
        out_specs=pl.BlockSpec((tile_rows, _LANES), lambda i: (i, 0)),
        compiler_params=pltpu.CompilerParams(
            # "parallel" lets Mosaic shard the row-tile axis across v7x's 2 TCs;
            # harmless no-op on v5e/v6e (1 TC).
            dimension_semantics=("parallel",),
        ),
        cost_estimate=cost,
    )(x2, w2)

    if main == total:
        return out2.reshape(orig_shape)

    # <128-element remainder computed with plain XLA (reviewer option (b)).
    tail = x_flat[main:] * w_flat[main:]
    return jnp.concatenate([out2.reshape(-1), tail]).reshape(orig_shape)


# ----------------------------------------------------------------------------
# JAX analogue of stannum.EmptyTin (glue; mirrors the registration API and the
# TinFunc.forward data flow: input fields + weight fields -> kernels -> outputs)
# ----------------------------------------------------------------------------
class EmptyTinPallas:
    def __init__(self):
        self.input_fields = []          # list of (shape, dtype)
        self.weight_fields = {}         # name -> (shape, dtype)
        self.weight_values = {}         # name -> jnp array (the "field" storage)
        self.output_fields = []         # list of (shape, dtype)
        self.kernel_bundles = []        # list of callables: (*inputs, *weights) -> [outputs]
        self.finished = False

    def register_input_field(self, shape, dtype=jnp.float32, needs_grad=None):
        assert not self.finished, "Registration after .finish()"
        self.input_fields.append((tuple(shape), dtype))
        return self

    def register_internal_field(self, shape, dtype=jnp.float32, name=None, value=None):
        assert not self.finished, "Registration after .finish()"
        field_name = name if name is not None else str(len(self.weight_fields))
        self.weight_fields[field_name] = (tuple(shape), dtype)
        self.weight_values[field_name] = (
            value if value is not None else jnp.zeros(shape, dtype)
        )
        return self

    def register_output_field(self, shape, dtype=jnp.float32, needs_grad=None):
        assert not self.finished, "Registration after .finish()"
        self.output_fields.append((tuple(shape), dtype))
        return self

    def register_kernel(self, kernel_fn, kernel_name=None):
        assert not self.finished, "Registration after .finish()"
        assert kernel_fn is not None, "Kernel must not be None"
        self.kernel_bundles.append(kernel_fn)
        return self

    def set_weight_field(self, field_name, tensor):
        assert self.finished, "Weights can only be set after finishing registrations"
        if isinstance(field_name, int):
            field_name = str(field_name)
        assert field_name in self.weight_fields
        self.weight_values[field_name] = tensor

    def finish(self):
        assert len(self.input_fields) > 0, "Must register at least 1 input field"
        assert len(self.output_fields) > 0, "Must register at least 1 output field"
        assert len(self.kernel_bundles) > 0, "Must register at least 1 kernel"
        self.finished = True
        return self

    def forward(self, *input_tensors):
        assert self.finished, "Call .finish() before using this layer"
        assert len(input_tensors) == len(self.input_fields)
        weight_tensors = tuple(self.weight_values[k] for k in self.weight_fields)
        # TinFunc.forward: fields <- tensors; run kernel bundles in order; read outputs.
        # TODO(synk): stannum lets multiple kernel bundles share mutated field state;
        # this functional analogue only supports independent bundles (last one's
        # outputs win), which matches the single-kernel case exercised here.
        outputs = None
        for kernel_fn in self.kernel_bundles:
            outputs = kernel_fn(*(tuple(input_tensors) + weight_tensors))
        outputs = list(outputs)
        assert len(outputs) == len(self.output_fields)
        # TODO(synk): TinFunc.backward (driving Taichi kernel.grad) has no direct
        # Pallas equivalent; JAX autodiff through the Pallas call would replace it.
        return tuple(outputs) if len(outputs) > 1 else outputs[0]

    __call__ = forward


if __name__ == "__main__":
    # Small NCHW shape consistent with a PyTorch-style input.
    N, C, H, W = 2, 4, 16, 16
    shape = (N, C, H, W)

    key = jax.random.PRNGKey(0)
    x = jax.random.normal(key, shape, dtype=jnp.float32)

    # Deterministic weight-field initialization (the "internal field" values).
    w = (jnp.arange(N * C * H * W, dtype=jnp.float32).reshape(shape) % 7.0) * 0.1 + 0.5

    # Registered kernel bundle: wraps the Pallas kernel, returns list of outputs.
    def kernel_bundle(x_in, w_in):
        return [_pallas_elementwise_mul(x_in, w_in)]

    tin = (
        EmptyTinPallas()
        .register_input_field(shape, jnp.float32)
        .register_internal_field(shape, jnp.float32, name="multiplier", value=w)
        .register_output_field(shape, jnp.float32)
        .register_kernel(kernel_bundle, kernel_name="elementwise_mul")
        .finish()
    )

    out = jax.block_until_ready(tin(x))
    ref = x * w
    assert out.shape == shape and out.dtype == jnp.float32
    assert jnp.allclose(out, ref, atol=1e-6, rtol=1e-6)

    # Aligned mid-size shape: zero-copy path, >=2 "parallel" grid steps.
    big_aligned = (4, 8, 64, 64)  # 131072 elems -> rows=1024 -> 2 grid steps
    ax = jax.random.normal(jax.random.PRNGKey(1), big_aligned, dtype=jnp.float32)
    aw = jax.random.normal(jax.random.PRNGKey(2), big_aligned, dtype=jnp.float32)
    aout = jax.block_until_ready(_pallas_elementwise_mul(ax, aw))
    assert jnp.allclose(aout, ax * aw, atol=1e-6, rtol=1e-6)

    # Ragged flat size: ragged last row-block (masked stores) + <128-elem XLA tail.
    big_ragged = (3, 5, 250, 131)  # 491250 elems, not a multiple of 128
    rx = jax.random.normal(jax.random.PRNGKey(3), big_ragged, dtype=jnp.float32)
    rw = jax.random.normal(jax.random.PRNGKey(4), big_ragged, dtype=jnp.float32)
    rout = jax.block_until_ready(_pallas_elementwise_mul(rx, rw))
    assert jnp.allclose(rout, rx * rw, atol=1e-6, rtol=1e-6)

    print("KERNEL_OK")
</pallas_src>

<mosaic_0001>
module attributes {stable_mosaic.version = 11 : i64} {
  func.func @_tin_elementwise_mul_kernel(%arg0: i32, %arg1: memref<16x128xf32, #tpu.memory_space<vmem>>, %arg2: memref<16x128xf32, #tpu.memory_space<vmem>>, %arg3: memref<16x128xf32, #tpu.memory_space<vmem>>) attributes {dimension_semantics = [#tpu.dimension_semantics<parallel>], iteration_bounds = array<i64: 1>, scalar_prefetch = 0 : i64, scratch_operands = 0 : i64, tpu.core_type = #tpu.core_type<tc>, window_params = [{transform_indices = @transform_0, window_bounds = array<i64: 16, 128>}, {transform_indices = @transform_1, window_bounds = array<i64: 16, 128>}, {transform_indices = @transform_2, window_bounds = array<i64: 16, 128>}]} {
    %c0 = arith.constant 0 : index
    %c0_0 = arith.constant 0 : index
    %0 = vector.load %arg1[%c0, %c0_0] : memref<16x128xf32, #tpu.memory_space<vmem>>, vector<16x128xf32>
    %c0_1 = arith.constant 0 : index
    %c0_2 = arith.constant 0 : index
    %1 = vector.load %arg2[%c0_1, %c0_2] : memref<16x128xf32, #tpu.memory_space<vmem>>, vector<16x128xf32>
    %2 = arith.mulf %0, %1 : vector<16x128xf32>
    %c0_3 = arith.constant 0 : index
    %c0_4 = arith.constant 0 : index
    %3 = vector.load %arg3[%c0_3, %c0_4] : memref<16x128xf32, #tpu.memory_space<vmem>>, vector<16x128xf32>
    tpu.vector_store %arg3[%c0_3, %c0_4], %2 {strides = array<i32>} : memref<16x128xf32, #tpu.memory_space<vmem>>, vector<16x128xf32>,
    return
  }
  func.func @transform_0(%arg0: i32) -> (i32, i32) {
    %c0_i32 = arith.constant 0 : i32
    %c0_i32_0 = arith.constant 0 : i32
    return %arg0, %c0_i32 : i32, i32
  }
  func.func @transform_1(%arg0: i32) -> (i32, i32) {
    %c0_i32 = arith.constant 0 : i32
    %c0_i32_0 = arith.constant 0 : i32
    return %arg0, %c0_i32 : i32, i32
  }
  func.func @transform_2(%arg0: i32) -> (i32, i32) {
    %c0_i32 = arith.constant 0 : i32
    %c0_i32_0 = arith.constant 0 : i32
    return %arg0, %c0_i32 : i32, i32
  }
}

</mosaic_0001>

<bundles_post_ra>
// kernel: _pallas_elementwise_mul.1
= control target key start
LH: loop header
LB: loop body
LE: loop exit
PB: predicated region body
PF: predicated region fallthrough
CT: control target
= control target key end

     0   :  { %s56_s0 = inlined_call_operand.vmem [shape: f32[16,128], index: 0, kind: input, shape index: {}]   ;;  %s57_s1 = inlined_call_operand.vmem [shape: f32[16,128], index: 1, kind: input, shape index: {}]   ;;  %s58_s2 = inlined_call_operand.vmem [shape: f32[16,128], index: 2, kind: output, shape index: {}]  }
   0x1   :  { %v11_v0 = vld [vmem:[%s56_s0] sm:$0xff]  ;;  %v12_v2 = vld [vmem:[%s56_s0 + $0x8] sm:$0xff] }
   0x2   :  { %v13_v1 = vld [vmem:[%s57_s1] sm:$0xff]  ;;  %v14_v4 = vld [vmem:[%s57_s1 + $0x8] sm:$0xff] }
   0x3   :  { %v15_v3 = vmul.f32 %v13_v1, %v11_v0  ;;  %v16_v5 = vmul.f32 %v14_v4, %v12_v2 }
   0x5   :  { %17 = vst [vmem:[%s58_s2] sm:$0xff] %v15_v3 }
   0x6   :  { %18 = vst [vmem:[%s58_s2 + $0x8] sm:$0xff] %v16_v5 }

</bundles_post_ra>
